<compile_context>
chip_gen: v5e
topology: v5e:2x2
jax: 0.10.0
libtpu: 0.0.40
codegen_flags: <defaults>
</compile_context>

<pallas_src>
import functools

import jax
import jax.numpy as jnp
from jax.experimental import pallas as pl
from jax.experimental.pallas import tpu as pltpu

_LANE = 128
_SUBLANE = 8


def _actor_kernel(x_ref, w1_ref, b1_ref, w2_ref, b2_ref, o_ref,
                  *, n_actions, lo, hi, compute_dtype):
    # fc1 + relu (MXU matmul, f32 accumulation).  Weight casts are no-ops when
    # weights were pre-cast in pack_params; x cast is a cheap per-tile VPU op.
    x = x_ref[...].astype(compute_dtype)
    w1 = w1_ref[...].astype(compute_dtype)
    h = jnp.dot(x, w1, preferred_element_type=jnp.float32)
    h = jnp.maximum(h + b1_ref[...], 0.0)            # (Bt, H) + (1, H)

    # fc2 + tanh.  W2/b2 are lane-padded to 128 columns (zeros past A) so the
    # MXU / EUP work on a lane-dense tile; only the first n_actions columns
    # are stored to HBM.
    w2 = w2_ref[...].astype(compute_dtype)
    a = jnp.dot(h.astype(compute_dtype), w2, preferred_element_type=jnp.float32)
    a = jnp.tanh(a + b2_ref[...])                    # (Bt, 128) + (1, 128)

    # Scale + clamp.  tanh output is in [-1, 1]; with hi > 0 and lo <= hi the
    # upper clamp never binds and the lower clamp binds only if lo > -hi.
    a = a * hi
    if hi > 0.0 and lo <= hi:
        if lo > -hi:
            a = jnp.maximum(a, lo)
        # else: clip is a no-op for the default symmetric bounds.
    else:
        a = jnp.clip(a, lo, hi)                      # keep exact clip semantics

    o_ref[...] = a[:, :n_actions].astype(o_ref.dtype)


def pack_params(w1, b1, w2, b2, compute_dtype=jnp.float32):
    """One-time packing: lane-pad fc2 to 128 cols and pre-cast weights.

    Biases stay f32 (they are added to the f32 MXU accumulation).
    """
    A = w2.shape[1]
    a_pad = ((A + _LANE - 1) // _LANE) * _LANE
    w2p = jnp.pad(w2, ((0, 0), (0, a_pad - A)))
    b2p = jnp.pad(b2, ((0, 0), (0, a_pad - A)))
    return (w1.astype(compute_dtype), b1.astype(jnp.float32),
            w2p.astype(compute_dtype), b2p.astype(jnp.float32))


def actor_3_net_forward(state_feature, w1, b1, w2p, b2p, action_bound, n_actions,
                        *, max_block_b=2048, compute_dtype=jnp.float32):
    """Pallas forward pass.  `w1..b2p` must come from `pack_params`."""
    B, F = state_feature.shape
    H = w1.shape[1]
    a_pad = w2p.shape[1]
    lo, hi = float(action_bound[0]), float(action_bound[1])

    kernel = functools.partial(_actor_kernel, n_actions=n_actions,
                               lo=lo, hi=hi, compute_dtype=compute_dtype)

    x_bytes = jnp.dtype(state_feature.dtype).itemsize
    w_bytes = jnp.dtype(w1.dtype).itemsize
    cost = pl.CostEstimate(
        flops=2 * B * (F * H + H * a_pad),
        transcendentals=B * a_pad,
        bytes_accessed=(B * (F * x_bytes + n_actions * 4)
                        + (F * H + H * a_pad) * w_bytes + (H + a_pad) * 4),
    )

    out_shape = jax.ShapeDtypeStruct((B, n_actions), jnp.float32)

    if B <= max_block_b:
        # Small batch: single no-grid invocation, everything VMEM-resident.
        return pl.pallas_call(
            kernel,
            out_shape=out_shape,
            in_specs=[pl.BlockSpec(memory_space=pltpu.MemorySpace.VMEM)] * 5,
            out_specs=pl.BlockSpec(memory_space=pltpu.MemorySpace.VMEM),
            cost_estimate=cost,
        )(state_feature, w1, b1, w2p, b2p)

    # Large batch: grid over batch tiles.  No batch padding in the wrapper —
    # Pallas edge blocks drop OOB output rows.  Tile count is made even so the
    # two v7x TensorCores split the "parallel" axis evenly (neutral on v5e/v6e).
    n_tiles = pl.cdiv(B, max_block_b)
    if n_tiles % 2:
        n_tiles += 1
    block_b = ((pl.cdiv(B, n_tiles) + _SUBLANE - 1) // _SUBLANE) * _SUBLANE
    grid = (pl.cdiv(B, block_b),)

    return pl.pallas_call(
        kernel,
        out_shape=out_shape,
        grid_spec=pl.GridSpec(
            grid=grid,
            in_specs=[
                pl.BlockSpec((block_b, F), lambda i: (i, 0)),   # x tiles
                pl.BlockSpec((F, H), lambda i: (0, 0)),         # W1 (resident)
                pl.BlockSpec((1, H), lambda i: (0, 0)),         # b1 (resident)
                pl.BlockSpec((H, a_pad), lambda i: (0, 0)),     # W2 pad (resident)
                pl.BlockSpec((1, a_pad), lambda i: (0, 0)),     # b2 pad (resident)
            ],
            out_specs=pl.BlockSpec((block_b, n_actions), lambda i: (i, 0)),
        ),
        compiler_params=pltpu.CompilerParams(
            dimension_semantics=("parallel",)),
        cost_estimate=cost,
    )(state_feature, w1, b1, w2p, b2p)


def init_params(key, n_features, n_hidden, n_actions):
    """Deterministic synthetic init (PyTorch Linear-style uniform fan-in bounds).

    Weights are stored transposed to (in, out) so the kernel does x @ W.
    """
    k1, k2, k3, k4 = jax.random.split(key, 4)
    bound1 = 1.0 / jnp.sqrt(n_features)
    bound2 = 1.0 / jnp.sqrt(n_hidden)
    w1 = jax.random.uniform(k1, (n_features, n_hidden), jnp.float32, -bound1, bound1)
    b1 = jax.random.uniform(k2, (1, n_hidden), jnp.float32, -bound1, bound1)
    w2 = jax.random.uniform(k3, (n_hidden, n_actions), jnp.float32, -bound2, bound2)
    b2 = jax.random.uniform(k4, (1, n_actions), jnp.float32, -bound2, bound2)
    return w1, b1, w2, b2


def _reference(x, w1, b1, w2, b2, action_bound):
    h = jnp.maximum(x @ w1 + b1, 0.0)
    a = jnp.tanh(h @ w2 + b2)
    return jnp.clip(a * action_bound[1], action_bound[0], action_bound[1])


if __name__ == "__main__":
    # Module hyperparameters (consistent with the PyTorch __init__ defaults).
    n_features = 32
    n_hidden = 64
    n_actions = 4
    action_bound = (-1.0, 1.0)

    key = jax.random.PRNGKey(0)
    k_x, k_p, k_big = jax.random.split(key, 3)
    w1, b1, w2, b2 = init_params(k_p, n_features, n_hidden, n_actions)

    # f32 packed params (default, bit-faithful) and bf16 packed params (MXU path).
    w1f, b1f, w2f, b2f = pack_params(w1, b1, w2, b2, compute_dtype=jnp.float32)
    w1h, b1h, w2h, b2h = pack_params(w1, b1, w2, b2, compute_dtype=jnp.bfloat16)

    # --- small batch: no-grid, fully VMEM-resident path (exact f32) ---
    batch = 8
    x = jax.random.normal(k_x, (batch, n_features), dtype=jnp.float32)
    out = actor_3_net_forward(x, w1f, b1f, w2f, b2f, action_bound, n_actions)
    out = jax.block_until_ready(out)
    ref = _reference(x, w1, b1, w2, b2, action_bound)
    assert out.shape == (batch, n_actions)
    assert jnp.allclose(out, ref, atol=1e-5), "small-batch f32 mismatch vs reference"

    # --- ragged batch: gridded path (small max_block_b to exercise the grid) ---
    big_batch = 600                       # not a multiple of the tile size
    xb = jax.random.normal(k_big, (big_batch, n_features), dtype=jnp.float32)
    refb = _reference(xb, w1, b1, w2, b2, action_bound)

    outb = actor_3_net_forward(xb, w1f, b1f, w2f, b2f, action_bound, n_actions,
                               max_block_b=256, compute_dtype=jnp.float32)
    outb = jax.block_until_ready(outb)
    assert outb.shape == (big_batch, n_actions)
    assert jnp.allclose(outb, refb, atol=1e-5), "batched f32 mismatch vs reference"

    # --- bf16 MXU path (weights pre-cast once; f32 accumulation kept) ---
    outb16 = actor_3_net_forward(xb, w1h, b1h, w2h, b2h, action_bound, n_actions,
                                 max_block_b=256, compute_dtype=jnp.bfloat16)
    outb16 = jax.block_until_ready(outb16)
    assert jnp.allclose(outb16, refb, atol=5e-2), "batched bf16 mismatch vs reference"

    print("KERNEL_OK")
</pallas_src>

<mosaic_0001>
module attributes {stable_mosaic.version = 11 : i64} {
  func.func @_actor_kernel(%arg0: memref<8x32xf32, #tpu.memory_space<vmem>>, %arg1: memref<32x64xf32, #tpu.memory_space<vmem>>, %arg2: memref<1x64xf32, #tpu.memory_space<vmem>>, %arg3: memref<64x128xf32, #tpu.memory_space<vmem>>, %arg4: memref<1x128xf32, #tpu.memory_space<vmem>>, %arg5: memref<8x4xf32, #tpu.memory_space<vmem>>) attributes {dimension_semantics = [], scalar_prefetch = 0 : i64, scratch_operands = 0 : i64, tpu.core_type = #tpu.core_type<tc>} {
    %c0 = arith.constant 0 : index
    %c0_0 = arith.constant 0 : index
    %0 = vector.load %arg0[%c0, %c0_0] : memref<8x32xf32, #tpu.memory_space<vmem>>, vector<8x32xf32>
    %c0_1 = arith.constant 0 : index
    %c0_2 = arith.constant 0 : index
    %1 = vector.load %arg1[%c0_1, %c0_2] : memref<32x64xf32, #tpu.memory_space<vmem>>, vector<32x64xf32>
    %cst = arith.constant dense<0.000000e+00> : vector<8x64xf32>
    %2 = tpu.matmul %0, %1, %cst {dimension_numbers = #tpu.dot_dimension_numbers<[1], [0], [0], [1], [0, 0, 1, 1], [], []>} : vector<8x32xf32>, vector<32x64xf32>, vector<8x64xf32> -> vector<8x64xf32>
    %c0_3 = arith.constant 0 : index
    %c0_4 = arith.constant 0 : index
    %3 = vector.load %arg2[%c0_3, %c0_4] : memref<1x64xf32, #tpu.memory_space<vmem>>, vector<1x64xf32>
    %4 = vector.broadcast %3 : vector<1x64xf32> to vector<8x64xf32>
    %5 = arith.addf %2, %4 : vector<8x64xf32>
    %cst_5 = arith.constant 0.000000e+00 : f32
    %6 = vector.broadcast %cst_5 : f32 to vector<8x64xf32>
    %7 = arith.maximumf %5, %6 : vector<8x64xf32>
    %c0_6 = arith.constant 0 : index
    %c0_7 = arith.constant 0 : index
    %8 = vector.load %arg3[%c0_6, %c0_7] : memref<64x128xf32, #tpu.memory_space<vmem>>, vector<64x128xf32>
    %cst_8 = arith.constant dense<0.000000e+00> : vector<8x128xf32>
    %9 = tpu.matmul %7, %8, %cst_8 {dimension_numbers = #tpu.dot_dimension_numbers<[1], [0], [0], [1], [0, 0, 1, 1], [], []>} : vector<8x64xf32>, vector<64x128xf32>, vector<8x128xf32> -> vector<8x128xf32>
    %c0_9 = arith.constant 0 : index
    %c0_10 = arith.constant 0 : index
    %10 = vector.load %arg4[%c0_9, %c0_10] : memref<1x128xf32, #tpu.memory_space<vmem>>, vector<1x128xf32>
    %11 = vector.broadcast %10 : vector<1x128xf32> to vector<8x128xf32>
    %12 = arith.addf %9, %11 : vector<8x128xf32>
    %13 = math.tanh %12 : vector<8x128xf32>
    %cst_11 = arith.constant 1.000000e+00 : f32
    %14 = vector.broadcast %cst_11 : f32 to vector<8x128xf32>
    %15 = arith.mulf %13, %14 : vector<8x128xf32>
    %16 = vector.extract_strided_slice %15 {offsets = [0, 0], sizes = [8, 4], strides = [1, 1]} : vector<8x128xf32> to vector<8x4xf32>
    %c0_12 = arith.constant 0 : index
    %c0_13 = arith.constant 0 : index
    %17 = vector.load %arg5[%c0_12, %c0_13] : memref<8x4xf32, #tpu.memory_space<vmem>>, vector<8x4xf32>
    tpu.vector_store %arg5[%c0_12, %c0_13], %16 {strides = array<i32>} : memref<8x4xf32, #tpu.memory_space<vmem>>, vector<8x4xf32>,
    return
  }
}

</mosaic_0001>

<bundles_post_ra>
// kernel: tpu_custom_call.1
= control target key start
LH: loop header
LB: loop body
LE: loop exit
PB: predicated region body
PF: predicated region fallthrough
CT: control target
= control target key end

     0   :  { %10 = vsyncpa [#allocation3], 0  ;;  %s284_s0 = inlined_call_operand.hbm [shape: f32[8,32], index: 0, kind: input, shape index: {}]   ;;  %s285_s1 = inlined_call_operand.hbm [shape: f32[32,64], index: 1, kind: input, shape index: {}]   ;;  %s286_s2 = inlined_call_operand.vmem [shape: f32[1,64], index: 2, kind: input, shape index: {}]   ;;  %s287_s3 = inlined_call_operand.hbm [shape: f32[64,128], index: 3, kind: input, shape index: {}]   ;;  %s288_s4 = inlined_call_operand.vmem [shape: f32[1,128], index: 4, kind: input, shape index: {}]   ;;  %s289_s5 = inlined_call_operand.vmem [shape: f32[8,4], index: 5, kind: output, shape index: {}]  }
   0x1   :  { %11 = vsyncpa [#allocation5], 0  ;;  %s27_s20 = sshll.u32 %s285_s1, 4  ;;  %s231_s21 = smov [#allocation4]   ;;  %s28_s20 = int_to_ptr.hbm [resolvable:$true] %s27_s20 }
   0x2   :  { %s29_s22 = sshll.u32 %s231_s21, 4  ;;  %s17_s25 = sshll.u32 %s284_s0, 4  ;;  %s30_s22 = int_to_ptr.vmem [resolvable:$true] %s29_s22  ;;  %s18_s25 = int_to_ptr.hbm [resolvable:$true] %s17_s25 }
   0x3   :  { %s232_s26 = smov 128   ;;  %s233_s27 = smov 8  }
   0x4   :  { %35 = dma.hbm_to_vmem [thread:$0]  %s28_s20, 512, %s30_s22, [#allocation5], %s232_s26, %s232_s26, %s233_s27  }
   0x5   :  { %s234_s28 = smov [#allocation2]   ;;  %s42_s7 = sshll.u32 %s287_s3, 4  ;;  %s43_s7 = int_to_ptr.hbm [resolvable:$true] %s42_s7 }
   0x6   :  { %s19_s29 = sshll.u32 %s234_s28, 4  ;;  %s235_s1 = smov [#allocation6]   ;;  %s20_s29 = int_to_ptr.vmem [resolvable:$true] %s19_s29 }
   0x7   :  { %22 = dma.hbm_to_vmem [thread:$0]  %s18_s25, 128, %s20_s29, [#allocation3]  }
   0x8   :  { %s44_s8 = sshll.u32 %s235_s1, 4  ;;  %s45_s8 = int_to_ptr.vmem [resolvable:$true] %s44_s8 }
   0x9   :  { %50 = dma.hbm_to_vmem [thread:$0]  %s43_s7, 1024, %s45_s8, [#allocation5], %s232_s26, %s232_s26, %s233_s27  }
   0xa   :  { %227 = dma.done.wait [#allocation3], 128  }
   0xb   :  { %228 = vsyncadd [#allocation3], 4294967168 }
   0xc   :  { %229 = dma.done.wait [#allocation5], 1536  }
   0xd   :  { %230 = vsyncadd [#allocation5], 4294965760  ;;  %v69_v0 = vld [vmem:[#allocation4 + $0x18] sm:$0xff]  ;;  %v68_v1 = vld [vmem:[#allocation4 + $0x10] sm:$0xff]  ;;  %vm74_vm0 = vcmask 261120   ;;  %vm111_vm1 = vcmask 523264  }
   0xe   :  { %90 = vmatpush.msra.mxu0 %v69_v0  ;;  %v106_v2 = vld [vmem:[#allocation6 + $0x38] sm:$0xff]  ;;  %v67_v3 = vld [vmem:[#allocation4 + $0x8] sm:$0xff]  ;;  %v105_v4 = vld [vmem:[#allocation6 + $0x30] sm:$0xff]  ;;  %vm136_vm2 = vcmask 31744  }
   0xf   :  { %123 = vmatpush.msra.mxu1 %v106_v2  ;;  %v104_v5 = vld [vmem:[#allocation6 + $0x28] sm:$0xff]  ;;  %v66_v6 = vld [vmem:[#allocation4] sm:$0xff]  ;;  %v65_v7 = vld [vmem:[#allocation2] sm:$0xff] }
  0x10   :  { %91 = vmatpush.msra.mxu0 %v68_v1  ;;  %v103_v8 = vld [vmem:[#allocation6 + $0x20] sm:$0xff]  ;;  %v102_v9 = vld [vmem:[#allocation6 + $0x18] sm:$0xff]  ;;  %v101_v10 = vld [vmem:[#allocation6 + $0x10] sm:$0xff] }
  0x11   :  { %124 = vmatpush.msra.mxu1 %v105_v4  ;;  %v100_v11 = vld [vmem:[#allocation6 + $0x8] sm:$0xff]  ;;  %v99_v12 = vld [vmem:[#allocation6] sm:$0xff]  ;;  %v151_v13 = vld [vmem:[%s286_s2] ss:$0 sm:$0xff] }
  0x12   :  { %92 = vmatpush.msra.mxu0 %v67_v3  ;;  %v152_v17 = vld [vmem:[%s288_s4] ss:$0 sm:$0xff] }
  0x13   :  { %125 = vmatpush.msra.mxu1 %v104_v5 }
  0x14   :  { %93 = vmatpush.msra.mxu0 %v66_v6 }
  0x15   :  { %144 = vmatmul.msk.f32.vlgmr.msra.gmra.mxu0 %vm74_vm0, %v65_v7  ;;  %126 = vmatpush.msra.mxu1 %v103_v8 }
  0x17   :  { %127 = vmatpush.msra.mxu1 %v102_v9 }
  0x19   :  { %128 = vmatpush.msra.mxu1 %v101_v10 }
  0x1b   :  { %129 = vmatpush.msra.mxu1 %v100_v11 }
  0x1d   :  { %130 = vmatpush.msra.mxu1 %v99_v12 }
  0x92   :  { %v95_v14 = vpop.f32.mrf.mxu0 }
  0x93   :  { %v96_v15 = vadd.f32 %v151_v13, %v95_v14 }
  0x95   :  { %v98_v16 = vmax.f32 %v96_v15, 0.0 }
  0x97   :  { %145 = vmatmul.msk.f32.vlgmr.msra.gmra.mxu1 %vm111_vm1, %v98_v16 }
 0x114   :  { %v132_v18 = vpop.f32.mrf.mxu1 }
 0x115   :  { %v133_v19 = vadd.f32 %v152_v17, %v132_v18 }
 0x117   :  { %153 = vtanh.f32 %v133_v19 }
 0x11d   :  { %v154_v20 = vpop.eup %153 }
 0x11e   :  { %137 = vst.msk [vmem:[%s289_s5] sm:$0xff] %vm136_vm2, %v154_v20 }
 0x11f   :  { %142 = vsyncpa [#allocation3], 1 }
 0x120   :  { %143 = vsyncpa [#allocation5], 1 }

</bundles_post_ra>
